<compile_context>
chip_gen: v5e
topology: v5e:2x2
jax: 0.10.0
libtpu: 0.0.40
codegen_flags: <defaults>
</compile_context>

<pallas_src>
import functools

import jax
import jax.numpy as jnp
from jax.experimental import pallas as pl
from jax.experimental.pallas import tpu as pltpu


_TILE_BYTE_CAP = 2 * 1024 * 1024        # per-block cap: BW saturates by ~1-2 MiB
_VMEM_LIMIT_BYTES = 32 * 1024 * 1024    # <= physical VMEM on all generations


def _min_rows(itemsize):
    """Minimum sequence rows per tile so sub-32-bit dtypes stay sublane-packed."""
    return max(8, 32 // int(itemsize))   # 8 for f32/i32, 16 for bf16, 32 for int8/fp8


def _choose_seq_tile(S, H, itemsize):
    """Largest divisor of S that is packing-aligned and fits the byte cap."""
    mr = _min_rows(itemsize)
    row_bytes = max(1, H * itemsize)
    cap_rows = max(mr, _TILE_BYTE_CAP // row_bytes)
    start = (min(S, cap_rows) // mr) * mr
    for ts in range(start, 0, -mr):
        if S % ts == 0:
            return ts
    # No packing-aligned divisor (small or odd S): full extent is always legal.
    return S


def _normalize_spans(nonzero_poss, S):
    """Clip to [0, S), drop empties, merge overlapping / adjacent spans."""
    spans = []
    for s, e in sorted((int(s), int(e)) for s, e in nonzero_poss):
        s, e = max(0, s), min(S, e)
        if e <= s:
            continue
        if spans and s <= spans[-1][1]:
            spans[-1] = (spans[-1][0], max(spans[-1][1], e))
        else:
            spans.append((s, e))
    return tuple(spans)


def _zero_embed_update_kernel(emb_ref, grad_ref, out_ref, *, factor, spans, ts):
    """out = emb - factor * grad, with seq positions inside `spans` left unchanged."""

    def plain_step():
        out_ref[...] = (emb_ref[...].astype(jnp.float32)
                        - factor * grad_ref[...].astype(jnp.float32)
                        ).astype(out_ref.dtype)

    if len(spans) == 0:              # static: no frozen positions at all
        plain_step()
        return

    seq0 = pl.program_id(1) * ts     # first sequence position of this tile

    # Cheap scalar classification of this tile against the static (merged) spans.
    frozen = False                   # a single span fully covers the tile -> pure copy
    touches = False                  # tile intersects at least one span   -> needs mask
    for s, e in spans:
        frozen = jnp.logical_or(frozen, (seq0 >= s) & (seq0 + ts <= e))
        touches = jnp.logical_or(touches, (seq0 < e) & (seq0 + ts > s))

    @pl.when(frozen)
    def _():
        out_ref[...] = emb_ref[...]

    @pl.when(jnp.logical_not(frozen) & jnp.logical_not(touches))
    def _():
        plain_step()

    @pl.when(jnp.logical_not(frozen) & touches)
    def _():
        # Mask varies only along seq: build (1, ts, 1) per-row scale and let it
        # broadcast along H inside a single fused multiply-subtract.
        pos = seq0 + jax.lax.broadcasted_iota(jnp.int32, (1, ts, 1), 1)
        in_span = jnp.zeros((1, ts, 1), dtype=jnp.bool_)
        for s, e in spans:
            in_span = in_span | ((pos >= s) & (pos < e))
        scale = jnp.where(in_span, jnp.float32(0.0), jnp.float32(factor))
        out_ref[...] = (emb_ref[...].astype(jnp.float32)
                        - scale * grad_ref[...].astype(jnp.float32)
                        ).astype(out_ref.dtype)


def zero_embed_step(prev_embeds, prev_grad, nonzero_poss, factor, seq_tile=None):
    """new_embeds = prev_embeds - factor * prev_grad, frozen on nonzero_poss spans."""
    B, S, H = prev_embeds.shape
    spans = _normalize_spans(nonzero_poss, S)

    itemsize = jnp.dtype(prev_embeds.dtype).itemsize
    if seq_tile is None:
        ts = _choose_seq_tile(S, H, itemsize)
    else:
        ts = int(seq_tile)
        assert S % ts == 0, "sequence tile must divide the sequence length"
        assert ts == S or ts % _min_rows(itemsize) == 0, (
            "sequence tile must be a multiple of the dtype's sublane packing "
            f"({_min_rows(itemsize)} rows) or equal the full sequence length")

    kernel = functools.partial(_zero_embed_update_kernel,
                               factor=float(factor), spans=spans, ts=ts)

    return pl.pallas_call(
        kernel,
        out_shape=jax.ShapeDtypeStruct((B, S, H), prev_embeds.dtype),
        grid=(B, S // ts),
        in_specs=[
            pl.BlockSpec((1, ts, H), lambda b, t: (b, t, 0)),   # prev_embeds tile
            pl.BlockSpec((1, ts, H), lambda b, t: (b, t, 0)),   # prev_grad tile
        ],
        out_specs=pl.BlockSpec((1, ts, H), lambda b, t: (b, t, 0)),
        input_output_aliases={0: 0},     # output semantically overwrites prev_embeds
        compiler_params=pltpu.CompilerParams(
            dimension_semantics=("parallel", "parallel"),
            vmem_limit_bytes=_VMEM_LIMIT_BYTES),
    )(prev_embeds, prev_grad)


class ZeroEmbedAdapter:
    """JAX/Pallas port of the stateful PyTorch module.

    JAX has no implicit `.grad` on arrays, so the gradient of the loss w.r.t.
    the previously returned embeddings must be passed explicitly to `forward`
    on calls after the first.
    """

    def __init__(self, nonzero_poss, factor):
        self.nonzero_poss = sorted(set(tuple(p) for p in nonzero_poss))
        self.factor = factor
        # Only the latest embedding is needed for the forward math; keeping the
        # full history (as the PyTorch module does) grows device memory without
        # bound, so we retain just the last one plus a step counter.
        self._latest = None
        self._num_calls = 0

    def forward(self, input_ids, input_embeds, prev_grad=None):
        self._num_calls += 1
        if self._latest is None:
            self._latest = input_embeds
            return self._latest
        # TODO(synk): PyTorch pulls prev_grad from autograd (.grad / retain_grad);
        # here it must be supplied explicitly by the caller.
        if prev_grad is None:
            raise ValueError(
                "ZeroEmbedAdapter.forward: prev_grad must be supplied on calls "
                "after the first (JAX has no implicit .grad).")
        self._latest = zero_embed_step(
            self._latest, prev_grad, self.nonzero_poss, self.factor)
        return self._latest


def _reference(prev_embeds, prev_grad, nonzero_poss, factor):
    fac = jnp.zeros_like(prev_embeds) + factor * prev_grad
    mask = jnp.zeros(prev_embeds.shape[1], dtype=bool)
    for s, e in nonzero_poss:
        mask = mask.at[s:e].set(True)
    fac = jnp.where(mask[None, :, None], 0.0, fac)
    return prev_embeds - fac


if __name__ == "__main__":
    key = jax.random.PRNGKey(0)
    k1, k2, k3, k4, k5, k6 = jax.random.split(key, 6)

    # --- Test 1: small module-consistent shapes through the adapter ---------
    B, S, H = 2, 8, 32
    input_ids = jnp.zeros((B, S), jnp.int32)            # unused by the forward math
    input_embeds = jax.random.normal(k1, (B, S, H), jnp.float32)
    fake_grad = jax.random.normal(k2, (B, S, H), jnp.float32)
    nonzero_poss = [(1, 3), (5, 6)]
    factor = 0.25

    # Reference computed BEFORE the kernel runs (output may alias prev_embeds).
    ref1 = _reference(input_embeds, fake_grad, nonzero_poss, factor)

    adapter = ZeroEmbedAdapter(nonzero_poss, factor)
    out1 = adapter.forward(input_ids, input_embeds)                  # state init
    out1 = jax.block_until_ready(out1)
    out2 = adapter.forward(input_ids, input_embeds, prev_grad=fake_grad)
    out2 = jax.block_until_ready(out2)
    assert jnp.allclose(out2, ref1, atol=1e-6), "mismatch vs reference (test 1)"

    # --- Test 2: multi-tile grid exercising frozen / free / boundary tiles,
    #             plus span merging (the (12,14) span is swallowed by (8,16)) --
    B2, S2, H2 = 1, 32, 128
    emb2 = jax.random.normal(k3, (B2, S2, H2), jnp.float32)
    grad2 = jax.random.normal(k4, (B2, S2, H2), jnp.float32)
    spans2 = [(8, 16), (12, 14), (18, 22)]   # tile [8,16) frozen, [16,24) boundary
    ref2 = _reference(emb2, grad2, spans2, 0.5)
    out3 = zero_embed_step(emb2, grad2, spans2, 0.5, seq_tile=8)
    out3 = jax.block_until_ready(out3)
    assert jnp.allclose(out3, ref2, atol=1e-6), "mismatch vs reference (test 2)"

    # --- Test 3: empty span list -> plain gradient step, automatic tile size -
    emb3 = jax.random.normal(k5, (B2, S2, H2), jnp.float32)
    grad3 = jax.random.normal(k6, (B2, S2, H2), jnp.float32)
    ref3 = _reference(emb3, grad3, [], 0.5)
    out4 = zero_embed_step(emb3, grad3, [], 0.5)
    out4 = jax.block_until_ready(out4)
    assert jnp.allclose(out4, ref3, atol=1e-6), "mismatch vs reference (test 3)"

    print("KERNEL_OK")
</pallas_src>

<mosaic_0001>
module attributes {stable_mosaic.version = 11 : i64} {
  func.func @_zero_embed_update_kernel(%arg0: i32, %arg1: i32, %arg2: memref<1x8x32xf32, #tpu.memory_space<vmem>>, %arg3: memref<1x8x32xf32, #tpu.memory_space<vmem>>, %arg4: memref<1x8x32xf32, #tpu.memory_space<vmem>>) attributes {dimension_semantics = [#tpu.dimension_semantics<parallel>, #tpu.dimension_semantics<parallel>], iteration_bounds = array<i64: 2, 1>, scalar_prefetch = 0 : i64, scratch_operands = 0 : i64, tpu.core_type = #tpu.core_type<tc>, window_params = [{transform_indices = @transform_0, window_bounds = array<i64: 1, 8, 32>}, {transform_indices = @transform_1, window_bounds = array<i64: 1, 8, 32>}, {transform_indices = @transform_2, window_bounds = array<i64: 1, 8, 32>}]} {
    %c8_i32 = arith.constant 8 : i32
    %0 = arith.muli %arg1, %c8_i32 : i32
    %c1_i32 = arith.constant 1 : i32
    %1 = arith.cmpi sge, %0, %c1_i32 : i32
    %c8_i32_0 = arith.constant 8 : i32
    %2 = arith.addi %0, %c8_i32_0 : i32
    %c3_i32 = arith.constant 3 : i32
    %3 = arith.cmpi sle, %2, %c3_i32 : i32
    %4 = arith.andi %1, %3 : i1
    %false = arith.constant false
    %5 = arith.ori %false, %4 : i1
    %c3_i32_1 = arith.constant 3 : i32
    %6 = arith.cmpi slt, %0, %c3_i32_1 : i32
    %c8_i32_2 = arith.constant 8 : i32
    %7 = arith.addi %0, %c8_i32_2 : i32
    %c1_i32_3 = arith.constant 1 : i32
    %8 = arith.cmpi sgt, %7, %c1_i32_3 : i32
    %9 = arith.andi %6, %8 : i1
    %false_4 = arith.constant false
    %10 = arith.ori %false_4, %9 : i1
    %c5_i32 = arith.constant 5 : i32
    %11 = arith.cmpi sge, %0, %c5_i32 : i32
    %c8_i32_5 = arith.constant 8 : i32
    %12 = arith.addi %0, %c8_i32_5 : i32
    %c6_i32 = arith.constant 6 : i32
    %13 = arith.cmpi sle, %12, %c6_i32 : i32
    %14 = arith.andi %11, %13 : i1
    %15 = arith.ori %5, %14 : i1
    %c6_i32_6 = arith.constant 6 : i32
    %16 = arith.cmpi slt, %0, %c6_i32_6 : i32
    %c8_i32_7 = arith.constant 8 : i32
    %17 = arith.addi %0, %c8_i32_7 : i32
    %c5_i32_8 = arith.constant 5 : i32
    %18 = arith.cmpi sgt, %17, %c5_i32_8 : i32
    %19 = arith.andi %16, %18 : i1
    %20 = arith.ori %10, %19 : i1
    %21 = arith.extui %15 : i1 to i32
    %c0_i32 = arith.constant 0 : i32
    %22 = arith.cmpi ne, %21, %c0_i32 : i32
    scf.if %22 {
      %c0 = arith.constant 0 : index
      %c0_13 = arith.constant 0 : index
      %c0_14 = arith.constant 0 : index
      %32 = vector.load %arg2[%c0, %c0_13, %c0_14] : memref<1x8x32xf32, #tpu.memory_space<vmem>>, vector<1x8x32xf32>
      %c0_15 = arith.constant 0 : index
      %c0_16 = arith.constant 0 : index
      %c0_17 = arith.constant 0 : index
      %33 = vector.load %arg4[%c0_15, %c0_16, %c0_17] : memref<1x8x32xf32, #tpu.memory_space<vmem>>, vector<1x8x32xf32>
      tpu.vector_store %arg4[%c0_15, %c0_16, %c0_17], %32 {strides = array<i32>} : memref<1x8x32xf32, #tpu.memory_space<vmem>>, vector<1x8x32xf32>,
    } else {
    }
    %true = arith.constant true
    %23 = arith.xori %15, %true : i1
    %true_9 = arith.constant true
    %24 = arith.xori %20, %true_9 : i1
    %25 = arith.andi %23, %24 : i1
    %26 = arith.extui %25 : i1 to i32
    %c0_i32_10 = arith.constant 0 : i32
    %27 = arith.cmpi ne, %26, %c0_i32_10 : i32
    scf.if %27 {
      %c0 = arith.constant 0 : index
      %c0_13 = arith.constant 0 : index
      %c0_14 = arith.constant 0 : index
      %32 = vector.load %arg2[%c0, %c0_13, %c0_14] : memref<1x8x32xf32, #tpu.memory_space<vmem>>, vector<1x8x32xf32>
      %c0_15 = arith.constant 0 : index
      %c0_16 = arith.constant 0 : index
      %c0_17 = arith.constant 0 : index
      %33 = vector.load %arg3[%c0_15, %c0_16, %c0_17] : memref<1x8x32xf32, #tpu.memory_space<vmem>>, vector<1x8x32xf32>
      %cst = arith.constant 2.500000e-01 : f32
      %34 = vector.broadcast %cst : f32 to vector<1x8x32xf32>
      %35 = arith.mulf %34, %33 : vector<1x8x32xf32>
      %36 = arith.subf %32, %35 : vector<1x8x32xf32>
      %c0_18 = arith.constant 0 : index
      %c0_19 = arith.constant 0 : index
      %c0_20 = arith.constant 0 : index
      %37 = vector.load %arg4[%c0_18, %c0_19, %c0_20] : memref<1x8x32xf32, #tpu.memory_space<vmem>>, vector<1x8x32xf32>
      tpu.vector_store %arg4[%c0_18, %c0_19, %c0_20], %36 {strides = array<i32>} : memref<1x8x32xf32, #tpu.memory_space<vmem>>, vector<1x8x32xf32>,
    } else {
    }
    %true_11 = arith.constant true
    %28 = arith.xori %15, %true_11 : i1
    %29 = arith.andi %28, %20 : i1
    %30 = arith.extui %29 : i1 to i32
    %c0_i32_12 = arith.constant 0 : i32
    %31 = arith.cmpi ne, %30, %c0_i32_12 : i32
    scf.if %31 {
      %32 = tpu.iota {dimensions = array<i32: 1>} : vector<1x8x1xi32>
      %33 = vector.broadcast %0 : i32 to vector<1x8x1xi32>
      %34 = arith.addi %33, %32 : vector<1x8x1xi32>
      %false_13 = arith.constant false
      %35 = vector.broadcast %false_13 : i1 to vector<1x8x1xi1>
      %c1_i32_14 = arith.constant 1 : i32
      %36 = vector.broadcast %c1_i32_14 : i32 to vector<1x8x1xi32>
      %37 = arith.cmpi sge, %34, %36 : vector<1x8x1xi32>
      %c3_i32_15 = arith.constant 3 : i32
      %38 = vector.broadcast %c3_i32_15 : i32 to vector<1x8x1xi32>
      %39 = arith.cmpi slt, %34, %38 : vector<1x8x1xi32>
      %40 = arith.andi %37, %39 : vector<1x8x1xi1>
      %41 = arith.ori %35, %40 : vector<1x8x1xi1>
      %c5_i32_16 = arith.constant 5 : i32
      %42 = vector.broadcast %c5_i32_16 : i32 to vector<1x8x1xi32>
      %43 = arith.cmpi sge, %34, %42 : vector<1x8x1xi32>
      %c6_i32_17 = arith.constant 6 : i32
      %44 = vector.broadcast %c6_i32_17 : i32 to vector<1x8x1xi32>
      %45 = arith.cmpi slt, %34, %44 : vector<1x8x1xi32>
      %46 = arith.andi %43, %45 : vector<1x8x1xi1>
      %47 = arith.ori %41, %46 : vector<1x8x1xi1>
      %cst = arith.constant 0.000000e+00 : f32
      %cst_18 = arith.constant 2.500000e-01 : f32
      %48 = vector.broadcast %cst : f32 to vector<1x8x1xf32>
      %49 = vector.broadcast %cst_18 : f32 to vector<1x8x1xf32>
      %50 = arith.select %47, %48, %49 : vector<1x8x1xi1>, vector<1x8x1xf32>
      %c0 = arith.constant 0 : index
      %c0_19 = arith.constant 0 : index
      %c0_20 = arith.constant 0 : index
      %51 = vector.load %arg2[%c0, %c0_19, %c0_20] : memref<1x8x32xf32, #tpu.memory_space<vmem>>, vector<1x8x32xf32>
      %c0_21 = arith.constant 0 : index
      %c0_22 = arith.constant 0 : index
      %c0_23 = arith.constant 0 : index
      %52 = vector.load %arg3[%c0_21, %c0_22, %c0_23] : memref<1x8x32xf32, #tpu.memory_space<vmem>>, vector<1x8x32xf32>
      %53 = vector.broadcast %50 : vector<1x8x1xf32> to vector<1x8x32xf32>
      %54 = arith.mulf %53, %52 : vector<1x8x32xf32>
      %55 = arith.subf %51, %54 : vector<1x8x32xf32>
      %c0_24 = arith.constant 0 : index
      %c0_25 = arith.constant 0 : index
      %c0_26 = arith.constant 0 : index
      %56 = vector.load %arg4[%c0_24, %c0_25, %c0_26] : memref<1x8x32xf32, #tpu.memory_space<vmem>>, vector<1x8x32xf32>
      tpu.vector_store %arg4[%c0_24, %c0_25, %c0_26], %55 {strides = array<i32>} : memref<1x8x32xf32, #tpu.memory_space<vmem>>, vector<1x8x32xf32>,
    } else {
    }
    return
  }
  func.func @transform_0(%arg0: i32, %arg1: i32) -> (i32, i32, i32) {
    %c0_i32 = arith.constant 0 : i32
    %c0_i32_0 = arith.constant 0 : i32
    return %arg0, %arg1, %c0_i32 : i32, i32, i32
  }
  func.func @transform_1(%arg0: i32, %arg1: i32) -> (i32, i32, i32) {
    %c0_i32 = arith.constant 0 : i32
    %c0_i32_0 = arith.constant 0 : i32
    return %arg0, %arg1, %c0_i32 : i32, i32, i32
  }
  func.func @transform_2(%arg0: i32, %arg1: i32) -> (i32, i32, i32) {
    %c0_i32 = arith.constant 0 : i32
    %c0_i32_0 = arith.constant 0 : i32
    return %arg0, %arg1, %c0_i32 : i32, i32, i32
  }
}

</mosaic_0001>

<bundles_post_ra>
// kernel: tpu_custom_call.1
= control target key start
LH: loop header
LB: loop body
LE: loop exit
PB: predicated region body
PF: predicated region fallthrough
CT: control target
= control target key end

     0   :  { %7 = vsyncpa [#allocation3], 0  ;;  %s710_s0 = inlined_call_operand.hbm [shape: f32[2,8,32], index: 0, kind: input, shape index: {}, may-alias: {0,2}]   ;;  %s711_s1 = inlined_call_operand.vmem [shape: f32[2,8,32], index: 1, kind: input, shape index: {}]   ;;  %s712_s2 = inlined_call_operand.hbm [shape: f32[2,8,32], index: 2, kind: output, shape index: {}, may-alias: {0,2}]  }
   0x1   :  { %9 = vsyncpa [#allocation3 + $0x1], 0 }
   0x2   :  { %10 = vsyncpa [#allocation4], 0 }
   0x3   :  { %12 = vsyncpa [#allocation4 + $0x1], 0  ;;  %s585_s9 = smov 0   ;;  %s587_s10 = smov 0  }
   0x4   :  { %s589_s11 = smov 0   ;;  %s591_s12 = smov 0  }
   0x5   :  { %s593_s13 = smov 0   ;;  %s595_s14 = smov 0  }
   0x6 LB: > { %s378_s15 = sadd.s32 4294967295, %s567_s14   ;;  %s379_s16 = sadd.s32 4294967294, %s567_s14   ;;  %s567_s14 = sphi %s595_s14, %s18_s14   ;;  %s563_s13 = sphi %s593_s13, %s721_s13   ;;  %s559_s12 = sphi %s591_s12, %s720_s12   ;;  %s555_s11 = sphi %s589_s11, %s719_s11   ;;  %s551_s10 = sphi %s587_s10, %s718_s10   ;;  %s547_s9 = sphi %s585_s9, %s717_s9  }
   0x7   : > { %s30_s17 = sadd.s32 1, %s563_s13  ;;  %s39_s18 = sadd.s32 1, %s555_s11 }
   0x8   : > { %p32_p0 = scmp.ge.s32.totalorder %s30_s17, 2  ;;  %p46_p1 = scmp.ne.s32.totalorder %s555_s11, %s551_s10 }
   0x9   : > { %p47_p2 = scmp.eq.s32.totalorder %s567_s14, 0  ;;  %p52_p3 = scmp.ne.s32.totalorder %s551_s10, %s547_s9 }
   0xa   : > { %s723_s17 = smov (%p32_p0, %s30_s17), 0  ;;  %p53_p5 = scmp.eq.s32.totalorder %s378_s15, 0 }
   0xb   : > { %p626_p4 = por %p47_p2, %p46_p1  ;;  %s34_s20 = ssub.s32 %s563_s13, %s723_s17 }
   0xc   : > { %p106_p6 = scmp.eq.s32.totalorder %s378_s15, 1  ;;  %p37_p7 = scmp.eq.s32.totalorder %s34_s20, 0 }
   0xd   : > { %p632_p8 = por %p53_p5, %p52_p3  ;;  %p112_p10 = scmp.eq.s32.totalorder %s379_s16, 1 }
   0xe   : > { %p636_p9 = por %p106_p6, %p46_p1  ;;  %p381_p12 = scmp.ge.s32.totalorder %s567_s14, 2 }
   0xf   : > { %s641_s23 = scalar_select %p37_p7, %s555_s11, %s39_s18  }
  0x10   : > { %p643_p11 = por %p112_p10, %p52_p3  ;;  %p404_p13 = scmp.lt.s32.totalorder %s567_s14, 2 }
  0x11   : > { %s132_s25 = sand.u32 1, %s555_s11   ;;  %s383_s27 = sshll.u32 %s563_s13, 3 }
  0x12   : > { %s382_s26 = sshll.u32 %s132_s25, 3  ;;  %s141_s30 = scalar_lea.hbm %s710_s0, %s383_s27 }
  0x13   : > { %s136_s3 = scalar_lea.vmem [#allocation2], %s382_s26  ;;  %s143_s5 = sshll.u32 %s141_s30, 4  ;;  %s144_s5 = int_to_ptr.hbm [resolvable:$true] %s143_s5 }
  0x14   : > { %s145_s4 = sshll.u32 %s136_s3, 4  ;;  %p397_p0 = pnand %p404_p13, %p626_p4  ;;  %s146_s4 = int_to_ptr.vmem [resolvable:$true] %s145_s4 }
  0x15   : > { %p384_p1 = scmp.ge.s32.totalorder %s567_s14, 1  ;;  %p160_p2 = scmp.lt.s32.totalorder %s567_s14, 3 }
  0x16   : > { %s133_s6 = scalar_lea.sflag [#allocation3], %s132_s25 }
  0x17   : > { %399 = dma.hbm_to_vmem [thread:$0]  (!%p397_p0), %s144_s5, 128, %s146_s4, %s133_s6  }
  0x18   : > { %p161_p3 = pnand %p384_p1, %p160_p2 }
  0x19   : > { %s659_s7 = sand.u32 (!%p161_p3), 1, %s551_s10  }
  0x1a   : > { %164 = sbr.rel (%p161_p3) target bundleno = 49 (0x31), region = 28  ;;  %s385_s8 = sshll.u32 (!%p161_p3), %s659_s7, 3 }
  0x1b   : > { %s167_s15 = scalar_lea.sflag (!%p161_p3), [#allocation3], %s659_s7  ;;  %s170_s16 = scalar_lea.vmem (!%p161_p3), [#allocation2], %s385_s8 }
  0x1f   : > { %538 = dma.done.wait (%p632_p8), %s167_s15, 128  }
  0x20   : > { %540 = vsyncadd (%p632_p8), %s167_s15, 4294967168  ;;  %p199_p4 = scmp.lt.s32.totalorder %s559_s12, 1  ;;  %v248_v0 = vlaneseq  ;;  %s389_s19 = sshll.u32 %s559_s12, 3  ;;  %v569_v3 = vmov 0.25   ;;  %v260_v5 = vld [vmem:[%s170_s16] sm:$0xff]  ;;  %vm264_vm7 = vcmask 261120  }
  0x21   : > { %s278_s29 = scalar_lea.hbm %s712_s2, %s389_s19  ;;  %s267_s4 = scalar_lea.sflag [#allocation4], %s659_s7 }
  0x22   : > { %s200_s18 = scalar_select %p199_p4, %s559_s12, 1  ;;  %v249_v1 = vshrl.u32 %v248_v0, 7 }
  0x23   : > { %s198_s12 = scalar_lea.vmem [#allocation5], %s385_s8  ;;  %s282_s3 = sshll.u32 %s278_s29, 4  ;;  %s283_s3 = int_to_ptr.hbm [resolvable:$true] %s282_s3 }
  0x24   : > { %s387_s20 = sshll.u32 %s200_s18, 3  ;;  %vm252_vm0 = vcmp.ge.s32.totalorder %v249_v1, 1  ;;  %vm253_vm1 = vcmp.lt.s32.totalorder %v249_v1, 3  ;;  %vm255_vm2 = vcmp.ge.s32.totalorder %v249_v1, 5  ;;  %vm256_vm3 = vcmp.lt.s32.totalorder %v249_v1, 6  ;;  %s280_s30 = sshll.u32 %s198_s12, 4  ;;  %s281_s30 = int_to_ptr.vmem [resolvable:$true] %s280_s30 }
  0x25   : > { %s205_s27 = scalar_lea.vmem %s711_s1, %s387_s20  ;;  %vm254_vm4 = vmand %vm252_vm0, %vm253_vm1  ;;  %s499_s5 = sshra.s32 %s283_s3, 4  ;;  %s500_s5 = int_to_ptr.hbm [resolvable:$true] %s499_s5 }
  0x26   : > { %vm257_vm5 = vmand %vm255_vm2, %vm256_vm3  ;;  %v261_v2 = vld [vmem:[%s205_s27] sm:$0xff]  ;;  %s501_s6 = scalar_lea.hbm %s500_s5, 8  ;;  %s505_s8 = scalar_lea.hbm %s712_s2, 16 }
  0x27   : > { %vm258_vm6 = vmor %vm254_vm4, %vm257_vm5  ;;  %p502_p5 = scmp.ne.s32.totalorder %s500_s5, %s501_s6  ;;  %p506_p8 = scmp.lt.s32.totalorder %s500_s5, %s712_s2 }
  0x28   : > { %v259_v4 = vsel %vm258_vm6, 0.0, %v569_v3  ;;  %p507_p10 = scmp.lt.s32.totalorder %s505_s8, %s501_s6 }
  0x29   : > { %v262_v6 = vmul.f32 %v261_v2, %v259_v4  ;;  %p503_p6 = pnand %p502_p5, %p636_p9 }
  0x2a   : > { %p508_p13 = por %p507_p10, %p506_p8 }
  0x2b   : > { %v263_v7 = vsub.f32 %v260_v5, %v262_v6  ;;  %p504_p7 = pneg %p503_p6 }
  0x2d   : > { %265 = vst.msk [vmem:[%s198_s12] sm:$0xff] %vm264_vm7, %v263_v7  ;;  %p509_p0 = pnand %p508_p13, %p504_p7 }
  0x2f   : > { %512 = shalt.err (!%p509_p0)
}
  0x30   : > { %394 = dma.vmem_to_hbm [thread:$0]  (%p636_p9), %s281_s30, 128, %s283_s3, %s267_s4  }
  0x31 PF: > { %s294_s7 = sand.u32 1, %s547_s9   ;;  %p401_p1 = pnand %p381_p12, %p643_p11 }
  0x32   : > { %s295_s20 = scalar_lea.sflag [#allocation4], %s294_s7 }
  0x33   : > { %p402_p2 = pneg %p401_p1 }
  0x35   : > { %542 = dma.done.wait (%p402_p2), %s295_s20, 128  }
  0x36   : > { %544 = vsyncadd (%p402_p2), %s295_s20, 4294967168  ;;  %s18_s14 = sadd.s32 1, %s567_s14   ;;  %s717_s9 = smov %s551_s10 }
  0x37   : > { %p15_p3 = scmp.ge.s32.totalorder %s18_s14, 4   ;;  %s718_s10 = smov %s555_s11 }
  0x38   : > { %s719_s11 = smov %s641_s23  ;;  %s720_s12 = smov %s563_s13 }
  0x39   : > { %s721_s13 = smov %s723_s17  ;;  %17 = sbr.rel (!%p15_p3) target bundleno = 6 (0x6), region = 88 }
  0x3e   :  { %301 = vsyncpa [#allocation3], 1 }
  0x3f   :  { %303 = vsyncpa [#allocation3 + $0x1], 1 }
  0x40   :  { %304 = vsyncpa [#allocation4], 1 }
  0x41   :  { %306 = vsyncpa [#allocation4 + $0x1], 1 }

</bundles_post_ra>
